<compile_context>
chip_gen: v5e
topology: v5e:2x2
jax: 0.10.0
libtpu: 0.0.40
codegen_flags: <defaults>
</compile_context>

<pallas_src>
import functools

import jax
import jax.numpy as jnp
from jax.experimental import pallas as pl
from jax.experimental.pallas import tpu as pltpu


def _round_up(x, m):
    return ((x + m - 1) // m) * m


def _linear_kernel(x_ref, w_ref, o_ref, acc_ref):
    # Grid = (M_tiles, N_tiles, K_tiles); K (reduction) is the last axis.
    @pl.when(pl.program_id(2) == 0)
    def _():
        acc_ref[...] = jnp.zeros_like(acc_ref)

    acc_ref[...] += jnp.dot(
        x_ref[...], w_ref[...], preferred_element_type=jnp.float32
    )

    @pl.when(pl.program_id(2) == pl.num_programs(2) - 1)
    def _():
        o_ref[...] = acc_ref[...].astype(o_ref.dtype)


@functools.partial(jax.jit, static_argnames=("tm", "tn", "tk", "out_dtype"))
def _matmul_call(xb, wb, *, tm, tn, tk, out_dtype):
    Mp, Kp = xb.shape
    _, Np = wb.shape
    grid = (Mp // tm, Np // tn, Kp // tk)

    bytes_accessed = (
        (Mp * Kp + Kp * Np) * xb.dtype.itemsize
        + Mp * Np * jnp.dtype(out_dtype).itemsize
    )
    cost = pl.CostEstimate(
        flops=2 * Mp * Np * Kp,
        transcendentals=0,
        bytes_accessed=bytes_accessed,
    )

    return pl.pallas_call(
        _linear_kernel,
        out_shape=jax.ShapeDtypeStruct((Mp, Np), out_dtype),
        grid_spec=pltpu.PrefetchScalarGridSpec(
            num_scalar_prefetch=0,
            grid=grid,
            in_specs=[
                pl.BlockSpec((tm, tk), lambda i, j, k: (i, k)),
                pl.BlockSpec((tk, tn), lambda i, j, k: (k, j)),
            ],
            out_specs=pl.BlockSpec((tm, tn), lambda i, j, k: (i, j)),
            scratch_shapes=[pltpu.VMEM((tm, tn), jnp.float32)],
        ),
        compiler_params=pltpu.CompilerParams(
            dimension_semantics=("parallel", "parallel", "arbitrary"),
            # Safe on v5e/v6e (128 MiB) and v7x (64 MiB/TC); tiles below only
            # need ~6 MiB including double buffers + f32 accumulator.
            vmem_limit_bytes=48 * 1024 * 1024,
        ),
        cost_estimate=cost,
    )(xb, wb)


def dense1to4_matmul(x2d, w_t):
    """y = x2d @ w_t with bf16 inputs and f32 accumulation on the MXU.

    x2d: (M, K) float32/bfloat16, w_t: (K, N).  Returns (M, N) in x2d.dtype.
    """
    M, K = x2d.shape
    Kw, N = w_t.shape
    assert K == Kw
    out_dtype = x2d.dtype

    # Tile selection: lane/MXU aligned, clamped to the (padded) problem size.
    # tm*tk + tk*tn bf16 (double-buffered) + tm*tn f32 acc + tm*tn out ~ 6 MiB.
    tm = min(256, _round_up(M, 8))
    tn = min(512, _round_up(N, 128))
    tk = min(1024, _round_up(K, 128))

    Mp = _round_up(M, tm)
    Kp = _round_up(K, tk)
    Np = _round_up(N, tn)

    # bf16 inputs for MXU peak / half the HBM traffic; f32 accumulate in-kernel.
    xb = x2d.astype(jnp.bfloat16)
    wb = w_t.astype(jnp.bfloat16)
    if (Mp, Kp) != (M, K):
        xb = jnp.pad(xb, ((0, Mp - M), (0, Kp - K)))
    if (Kp, Np) != (K, N):
        wb = jnp.pad(wb, ((0, Kp - K), (0, Np - N)))

    y = _matmul_call(xb, wb, tm=tm, tn=tn, tk=tk, out_dtype=out_dtype)
    if (Mp, Np) != (M, N):
        y = y[:M, :N]
    return y


class Dense1to4:
    """JAX/Pallas port of the PyTorch Dense1to4 module (Linear, no bias)."""

    def __init__(self, dim, ffn_dim, key):
        self.dim = dim
        self.out_dim = ffn_dim * 2
        # Deterministic init mimicking nn.Linear's uniform(-1/sqrt(dim), 1/sqrt(dim)).
        bound = 1.0 / (dim ** 0.5)
        # PyTorch weight shape: (out_features, in_features) = (ffn_dim*2, dim).
        self.weight = jax.random.uniform(
            key, (self.out_dim, dim), dtype=jnp.float32, minval=-bound, maxval=bound
        )
        # Pre-transpose ONCE at init -> no per-forward XLA transpose copy.
        self.weight_t = jnp.asarray(self.weight.T)  # (dim, 2*ffn_dim)
        self.numel = dim * ffn_dim * 2

    def __call__(self, x):
        # x: (..., dim) -> (..., 2*ffn_dim), exactly like nn.Linear without bias.
        lead = x.shape[:-1]
        x2d = x.reshape(-1, self.dim)
        y2d = dense1to4_matmul(x2d, self.weight_t)
        return y2d.reshape(*lead, self.out_dim)


if __name__ == "__main__":
    key = jax.random.PRNGKey(0)
    k_w, k_x = jax.random.split(key)

    batch, seq, dim, ffn_dim = 2, 8, 32, 32
    model = Dense1to4(dim, ffn_dim, k_w)

    x = jax.random.normal(k_x, (batch, seq, dim), dtype=jnp.float32)

    y = model(x)
    y = jax.block_until_ready(y)
    assert y.shape == (batch, seq, ffn_dim * 2)

    # Tight check vs. a bf16-input / f32-accumulate reference (same numerics
    # as the kernel's MXU path).
    x2d = x.reshape(-1, dim)
    y_ref_bf16 = jnp.dot(
        x2d.astype(jnp.bfloat16),
        model.weight_t.astype(jnp.bfloat16),
        preferred_element_type=jnp.float32,
    ).reshape(batch, seq, ffn_dim * 2)
    assert jnp.allclose(y, y_ref_bf16, atol=1e-4, rtol=1e-4)

    # Loose check vs. the full-f32 PyTorch-equivalent math (bf16 cast error).
    y_ref_f32 = x @ model.weight.T
    assert jnp.allclose(y, y_ref_f32, atol=2e-2, rtol=2e-2)

    print("KERNEL_OK")
</pallas_src>

<mosaic_0001>
module attributes {stable_mosaic.version = 11 : i64} {
  func.func @_linear_kernel(%arg0: i32, %arg1: i32, %arg2: i32, %arg3: memref<16x128xbf16, #tpu.memory_space<vmem>>, %arg4: memref<128x128xbf16, #tpu.memory_space<vmem>>, %arg5: memref<16x128xf32, #tpu.memory_space<vmem>>, %arg6: memref<16x128xf32, #tpu.memory_space<vmem>>) attributes {dimension_semantics = [#tpu.dimension_semantics<parallel>, #tpu.dimension_semantics<parallel>, #tpu.dimension_semantics<arbitrary>], iteration_bounds = array<i64: 1, 1, 1>, scalar_prefetch = 0 : i64, scratch_operands = 1 : i64, tpu.core_type = #tpu.core_type<tc>, window_params = [{transform_indices = @transform_0, window_bounds = array<i64: 16, 128>}, {transform_indices = @transform_1, window_bounds = array<i64: 128, 128>}, {transform_indices = @transform_2, window_bounds = array<i64: 16, 128>}]} {
    %c0_i32 = arith.constant 0 : i32
    %0 = arith.cmpi eq, %arg2, %c0_i32 : i32
    %1 = arith.extui %0 : i1 to i32
    %c0_i32_0 = arith.constant 0 : i32
    %2 = arith.cmpi ne, %1, %c0_i32_0 : i32
    scf.if %2 {
      %cst_10 = arith.constant 0.000000e+00 : f32
      %12 = vector.broadcast %cst_10 : f32 to vector<16x128xf32>
      %c0_11 = arith.constant 0 : index
      %c0_12 = arith.constant 0 : index
      %13 = vector.load %arg6[%c0_11, %c0_12] : memref<16x128xf32, #tpu.memory_space<vmem>>, vector<16x128xf32>
      tpu.vector_store %arg6[%c0_11, %c0_12], %12 {strides = array<i32>} : memref<16x128xf32, #tpu.memory_space<vmem>>, vector<16x128xf32>,
    } else {
    }
    %c0 = arith.constant 0 : index
    %c0_1 = arith.constant 0 : index
    %3 = vector.load %arg6[%c0, %c0_1] : memref<16x128xf32, #tpu.memory_space<vmem>>, vector<16x128xf32>
    %c0_2 = arith.constant 0 : index
    %c0_3 = arith.constant 0 : index
    %4 = vector.load %arg3[%c0_2, %c0_3] : memref<16x128xbf16, #tpu.memory_space<vmem>>, vector<16x128xbf16>
    %c0_4 = arith.constant 0 : index
    %c0_5 = arith.constant 0 : index
    %5 = vector.load %arg4[%c0_4, %c0_5] : memref<128x128xbf16, #tpu.memory_space<vmem>>, vector<128x128xbf16>
    %cst = arith.constant dense<0.000000e+00> : vector<16x128xf32>
    %6 = tpu.matmul %4, %5, %cst {dimension_numbers = #tpu.dot_dimension_numbers<[1], [0], [0], [1], [0, 0, 1, 1], [], []>} : vector<16x128xbf16>, vector<128x128xbf16>, vector<16x128xf32> -> vector<16x128xf32>
    %7 = arith.addf %3, %6 : vector<16x128xf32>
    %c0_6 = arith.constant 0 : index
    %c0_7 = arith.constant 0 : index
    %8 = vector.load %arg6[%c0_6, %c0_7] : memref<16x128xf32, #tpu.memory_space<vmem>>, vector<16x128xf32>
    tpu.vector_store %arg6[%c0_6, %c0_7], %7 {strides = array<i32>} : memref<16x128xf32, #tpu.memory_space<vmem>>, vector<16x128xf32>,
    %c0_i32_8 = arith.constant 0 : i32
    %9 = arith.cmpi eq, %arg2, %c0_i32_8 : i32
    %10 = arith.extui %9 : i1 to i32
    %c0_i32_9 = arith.constant 0 : i32
    %11 = arith.cmpi ne, %10, %c0_i32_9 : i32
    scf.if %11 {
      %c0_10 = arith.constant 0 : index
      %c0_11 = arith.constant 0 : index
      %12 = vector.load %arg6[%c0_10, %c0_11] : memref<16x128xf32, #tpu.memory_space<vmem>>, vector<16x128xf32>
      %c0_12 = arith.constant 0 : index
      %c0_13 = arith.constant 0 : index
      %13 = vector.load %arg5[%c0_12, %c0_13] : memref<16x128xf32, #tpu.memory_space<vmem>>, vector<16x128xf32>
      tpu.vector_store %arg5[%c0_12, %c0_13], %12 {strides = array<i32>} : memref<16x128xf32, #tpu.memory_space<vmem>>, vector<16x128xf32>,
    } else {
    }
    return
  }
  func.func @transform_0(%arg0: i32, %arg1: i32, %arg2: i32) -> (i32, i32) {
    %c0_i32 = arith.constant 0 : i32
    return %arg0, %arg2 : i32, i32
  }
  func.func @transform_1(%arg0: i32, %arg1: i32, %arg2: i32) -> (i32, i32) {
    %c0_i32 = arith.constant 0 : i32
    return %arg2, %arg1 : i32, i32
  }
  func.func @transform_2(%arg0: i32, %arg1: i32, %arg2: i32) -> (i32, i32) {
    %c0_i32 = arith.constant 0 : i32
    return %arg0, %arg1 : i32, i32
  }
}

</mosaic_0001>

<bundles_post_ra>
// kernel: _matmul_call.1
= control target key start
LH: loop header
LB: loop body
LE: loop exit
PB: predicated region body
PF: predicated region fallthrough
CT: control target
= control target key end

     0   :  { %7 = vsyncpa [#allocation4], 0  ;;  %s330_s0 = inlined_call_operand.hbm [shape: bf16[16,128], index: 0, kind: input, shape index: {}]   ;;  %s331_s1 = inlined_call_operand.hbm [shape: bf16[128,128], index: 1, kind: input, shape index: {}]   ;;  %s332_s2 = inlined_call_operand.hbm [shape: f32[16,128], index: 2, kind: output, shape index: {}]  }
   0x1   :  { %8 = vsyncpa [#allocation7], 0 }
   0x2   :  { %9 = vsyncpa [#allocation5], 0  ;;  %s14_s11 = sshll.u32 %s330_s0, 4  ;;  %s299_s12 = smov [#allocation3]   ;;  %s15_s11 = int_to_ptr.hbm [resolvable:$true] %s14_s11 }
   0x3   :  { %s16_s13 = sshll.u32 %s299_s12, 4  ;;  %s27_s16 = sshll.u32 %s331_s1, 4  ;;  %s17_s13 = int_to_ptr.vmem [resolvable:$true] %s16_s13  ;;  %s28_s16 = int_to_ptr.hbm [resolvable:$true] %s27_s16 }
   0x4   :  { %s300_s17 = smov 64   ;;  %s301_s18 = smov 4  }
   0x5   :  { %22 = dma.hbm_to_vmem [thread:$0]  %s15_s11, 128, %s17_s13, [#allocation4], %s300_s17, %s300_s17, %s301_s18  }
   0x6   :  { %s302_s19 = smov [#allocation6]  }
   0x7   :  { %s29_s20 = sshll.u32 %s302_s19, 4  ;;  %s30_s20 = int_to_ptr.vmem [resolvable:$true] %s29_s20 }
   0x8   :  { %35 = dma.hbm_to_vmem [thread:$0]  %s28_s16, 1024, %s30_s20, [#allocation7], %s300_s17, %s300_s17, %s301_s18  }
   0x9   :  { %293 = dma.done.wait [#allocation4], 128  }
   0xa   :  { %294 = vsyncadd [#allocation4], 4294967168 }
   0xb   :  { %295 = dma.done.wait [#allocation7], 1024  }
   0xc   :  { %296 = vsyncadd [#allocation7], 4294966272  ;;  %v213_v0 = vld [vmem:[#allocation6 + $0x38] sm:$0xff]  ;;  %v212_v1 = vld [vmem:[#allocation6 + $0x30] sm:$0xff]  ;;  %s303_s0 = smov [#allocation8]   ;;  %s155_s23 = sshll.u32 %s332_s2, 4  ;;  %s156_s23 = int_to_ptr.hbm [resolvable:$true] %s155_s23 }
   0xd   :  { %124 = vmatpush.bf16.msra.mxu0 %v213_v0  ;;  %v211_v2 = vld [vmem:[#allocation6 + $0x28] sm:$0xff]  ;;  %v210_v3 = vld [vmem:[#allocation6 + $0x20] sm:$0xff]  ;;  %v209_v4 = vld [vmem:[#allocation6 + $0x18] sm:$0xff]  ;;  %s153_s1 = sshll.u32 %s303_s0, 4  ;;  %s304_s24 = smov 128   ;;  %s154_s1 = int_to_ptr.vmem [resolvable:$true] %s153_s1 }
   0xe   :  { %v208_v5 = vld [vmem:[#allocation6 + $0x10] sm:$0xff]  ;;  %v207_v6 = vld [vmem:[#allocation6 + $0x8] sm:$0xff]  ;;  %v206_v7 = vld [vmem:[#allocation6] sm:$0xff]  ;;  %s305_s25 = smov 8  }
   0xf   :  { %v205_v8 = vld [vmem:[#allocation3] sm:$0xff] }
  0x11   :  { %125 = vmatpush.bf16.msra.mxu0 %v212_v1 }
  0x15   :  { %126 = vmatpush.bf16.msra.mxu0 %v211_v2 }
  0x19   :  { %127 = vmatpush.bf16.msra.mxu0 %v210_v3 }
  0x1d   :  { %128 = vmatpush.bf16.msra.mxu0 %v209_v4 }
  0x21   :  { %129 = vmatpush.bf16.msra.mxu0 %v208_v5 }
  0x25   :  { %130 = vmatpush.bf16.msra.mxu0 %v207_v6 }
  0x29   :  { %131 = vmatpush.bf16.msra.mxu0 %v206_v7 }
  0x2c   :  { %132 = vmatmul.bf16.vlgmr.msra.gmra.mxu0 %v205_v8 }
  0xa9   :  { %v133_v9 = vpop.f32.mrf.mxu0 }
  0xaa   :  { %147 = vst [vmem:[#allocation8] sm:$0xff] %v133_v9 }
  0xb1   :  { %v135_v10 = vpop.f32.mrf.mxu0 }
  0xb2   :  { %148 = vst [vmem:[#allocation8 + $0x8] sm:$0xff] %v135_v10 }
  0xb3   :  { %161 = dma.vmem_to_hbm [thread:$0]  %s154_s1, 256, %s156_s23, [#allocation5], %s304_s24, %s304_s24, %s305_s25  }
  0xb4   :  { %297 = dma.done.wait [#allocation5], 256  }
  0xb5   :  { %298 = vsyncadd [#allocation5], 4294967040 }
  0xb6   :  { %166 = vsyncpa [#allocation4], 1 }
  0xb7   :  { %167 = vsyncpa [#allocation7], 1 }
  0xb8   :  { %168 = vsyncpa [#allocation5], 1 }

</bundles_post_ra>
